<compile_context>
chip_gen: v7x
topology: tpu7x:2x2x1
jax: 0.10.0
libtpu: 0.0.40
codegen_flags: <defaults>
</compile_context>

<pallas_src>
import functools

import jax
import jax.numpy as jnp
import numpy as np
from jax.experimental import pallas as pl
from jax.experimental.pallas import tpu as pltpu


# ---------------------------------------------------------------------------
# Fused kernel: projections + AttenSeq2Seq + FC + residual + LayerNorm
# ---------------------------------------------------------------------------
def _fused_mha_kernel(xq_ref, xh_ref,
                      wq_ref, wh_ref, bq_ref, bh_ref,
                      ah_ref, aq_ref, ab_ref,
                      uq_ref, uc_ref, ub_ref,
                      fcp_ref, lng_ref, lnb_ref,
                      o_ref):
    f32 = jnp.float32
    xq = xq_ref[...]                                              # (N, inc)

    # Head-batched projections; W_Q∘wq / W_H∘wh folded host-side.
    qp = jnp.dot(xq, wq_ref[...], preferred_element_type=f32) + bq_ref[...]      # (N, H*D)
    hp = jnp.dot(xh_ref[...], wh_ref[...], preferred_element_type=f32) + bh_ref[...]

    # energy = tanh(cat([hp, qp], feat) @ Wa^T + b) — concat removed via split weights.
    energy = jnp.tanh(
        jnp.dot(hp, ah_ref[...], preferred_element_type=f32)
        + jnp.dot(qp, aq_ref[...], preferred_element_type=f32)
        + ab_ref[...])

    # softmax over the point axis (dim 0), independently per (head, feature) column
    m = jnp.max(energy, axis=0, keepdims=True)
    e = jnp.exp(energy - m)
    attn = e * pl.reciprocal(jnp.sum(e, axis=0, keepdims=True), approx=True)

    context = attn * hp

    # out = tanh(cat([qp, context], feat) @ Wu^T + b); the update weights'
    # output columns are pre-permuted host-side so the literal
    # transpose(1,2).reshape(-1, H*D) becomes contiguous slicing below.
    out_p = jnp.tanh(
        jnp.dot(qp, uq_ref[...], preferred_element_type=f32)
        + jnp.dot(context, uc_ref[...], preferred_element_type=f32)
        + ub_ref[...])                                            # (N, H*D)

    n_pts = xq.shape[0]
    t = out_p.T                                  # (H*D, N): single 2-D XLU transpose
    g_cnt = t.shape[0] // n_pts                  # G = H*D / N

    # FC over the permuted context: y = sum_g t[g*N:(g+1)*N, :] @ FCp[g]
    y = jnp.dot(t[0:n_pts, :], fcp_ref[0], preferred_element_type=f32)
    for g in range(1, g_cnt):
        y = y + jnp.dot(t[g * n_pts:(g + 1) * n_pts, :], fcp_ref[g],
                        preferred_element_type=f32)

    # residual + LayerNorm
    y = y + xq
    mu = jnp.mean(y, axis=-1, keepdims=True)
    var = jnp.mean((y - mu) ** 2, axis=-1, keepdims=True)
    yn = (y - mu) * jax.lax.rsqrt(var + 1e-5)
    o_ref[...] = (yn * lng_ref[...] + lnb_ref[...]).astype(o_ref.dtype)


# ---------------------------------------------------------------------------
# Host-side (one-time) weight preparation: fold, block-diagonalize, split,
# permute — so the kernel never transposes/concatenates/permutes weights.
# ---------------------------------------------------------------------------
def _prepare_fused_params(p, n_heads, hidden_dim, n_points):
    H, D, N = n_heads, hidden_dim, n_points
    HD = H * D
    inc = p["W_Q"].shape[1]
    assert inc == D, "module is only shape-consistent when inc == hidden_dim"
    assert HD % N == 0, "fused FC path assumes n_points divides n_heads*hidden_dim"
    G = HD // N

    eye = jnp.eye(H, dtype=jnp.float32)
    bd = lambda w: jnp.kron(eye, w.T)            # block-diag of w.T (per-head shared weight)

    # hx = cat([hidden(=hp), query(=qp)]) -> split attention weight
    wa_h = p["att_a_w"][:, :inc]
    wa_q = p["att_a_w"][:, inc:]
    # q2 = cat([query(=qp), context]) -> split update weight
    wu_q = p["att_u_w"][:, :inc]
    wu_c = p["att_u_w"][:, inc:]

    # Column permutation of the update output realizing the literal
    # context.transpose(1, 2).reshape(-1, H*D):   out_perm[:, g*N + r] == out[:, r*G + g]
    k = np.arange(HD)
    perm = (k % N) * G + (k // N)

    uq = bd(wu_q)[:, perm]
    uc = bd(wu_c)[:, perm]
    ub = jnp.tile(p["att_u_b"], (1, H))[:, perm]

    # FC re-laid out so FCp[g, n, j] == FC[j, g*N + n]
    fcp = jnp.transpose(p["FC"].reshape(D, G, N), (1, 2, 0))      # (G, N, D)

    return dict(
        wq=p["W_Q"].T @ bd(p["att_wq_w"]),       # (inc, H*D)  W_Q folded with wq
        wh=p["W_H"].T @ bd(p["att_wh_w"]),       # (inc, H*D)  W_H folded with wh
        bq=jnp.tile(p["att_wq_b"], (1, H)),
        bh=jnp.tile(p["att_wh_b"], (1, H)),
        ah=bd(wa_h), aq=bd(wa_q), ab=jnp.tile(p["att_a_b"], (1, H)),
        uq=uq, uc=uc, ub=ub,
        fcp=fcp, lng=p["ln_g"], lnb=p["ln_b"],
    )


# ---------------------------------------------------------------------------
# Wrapper
# ---------------------------------------------------------------------------
@functools.partial(jax.jit, static_argnames=("n_heads", "hidden_dim"))
def multi_head_attention(xq, xh, params, *, n_heads, hidden_dim):
    N, inc = xq.shape
    D = hidden_dim
    fp = _prepare_fused_params(params, n_heads, hidden_dim, N)

    args = (xq, xh, fp["wq"], fp["wh"], fp["bq"], fp["bh"],
            fp["ah"], fp["aq"], fp["ab"], fp["uq"], fp["uc"], fp["ub"],
            fp["fcp"], fp["lng"], fp["lnb"])

    def _full(shape):
        nd = len(shape)
        return pl.BlockSpec(tuple(shape), lambda *_: (0,) * nd)

    return pl.pallas_call(
        _fused_mha_kernel,
        grid=(1,),
        in_specs=[_full(a.shape) for a in args],
        out_specs=_full((N, D)),
        out_shape=jax.ShapeDtypeStruct((N, D), jnp.float32),
        compiler_params=pltpu.CompilerParams(
            dimension_semantics=("arbitrary",)),
    )(*args)


# ---------------------------------------------------------------------------
# Pure-JAX reference (literal, unfused math) for a sanity check
# ---------------------------------------------------------------------------
def reference(xq, xh, p, H, D):
    N = xq.shape[0]
    q0 = xq @ p["W_Q"].T
    h0 = xh @ p["W_H"].T
    query = jnp.swapaxes(q0.reshape(N, H, D), 0, 1)
    hidden = jnp.swapaxes(h0.reshape(N, H, D), 0, 1)
    qp = query @ p["att_wq_w"].T + p["att_wq_b"]
    hp = hidden @ p["att_wh_w"].T + p["att_wh_b"]
    hx = jnp.concatenate([hp, qp], axis=-1)
    energy = jnp.tanh(hx @ p["att_a_w"].T + p["att_a_b"])
    attn = jax.nn.softmax(energy, axis=1)
    context = attn * hp
    q2 = jnp.concatenate([qp, context], axis=-1)
    out = jnp.tanh(q2 @ p["att_u_w"].T + p["att_u_b"])
    ctx_flat = jnp.swapaxes(out, 1, 2).reshape(-1, H * D)
    y = ctx_flat @ p["FC"].T + xq
    mean = y.mean(-1, keepdims=True)
    var = ((y - mean) ** 2).mean(-1, keepdims=True)
    return (y - mean) / jnp.sqrt(var + 1e-5) * p["ln_g"] + p["ln_b"]


# ---------------------------------------------------------------------------
if __name__ == "__main__":
    # Small shapes consistent with the forward: N points, inc == hidden_dim
    N = 8
    inc = 32
    hidden_dim = 32
    n_heads = 2
    D, H = hidden_dim, n_heads

    key = jax.random.PRNGKey(0)
    ks = jax.random.split(key, 16)
    f32 = jnp.float32
    s = 0.1  # small deterministic init scale

    params = {
        # torch Linear weights are (out_features, in_features)
        "W_Q": jax.random.normal(ks[0], (H * D, inc), f32) * s,
        "W_H": jax.random.normal(ks[1], (H * D, inc), f32) * s,
        "FC": jax.random.normal(ks[2], (D, H * D), f32) * s,
        "ln_g": jax.random.normal(ks[3], (1, D), f32) * s + 1.0,
        "ln_b": jax.random.normal(ks[4], (1, D), f32) * s,
        # AttenSeq2Seq (shared across heads)
        "att_wq_w": jax.random.normal(ks[5], (D, inc), f32) * s,
        "att_wq_b": jax.random.normal(ks[6], (1, D), f32) * s,
        "att_wh_w": jax.random.normal(ks[7], (D, inc), f32) * s,
        "att_wh_b": jax.random.normal(ks[8], (1, D), f32) * s,
        "att_a_w": jax.random.normal(ks[9], (D, inc + D), f32) * s,
        "att_a_b": jax.random.normal(ks[10], (1, D), f32) * s,
        "att_u_w": jax.random.normal(ks[11], (D, inc + D), f32) * s,
        "att_u_b": jax.random.normal(ks[12], (1, D), f32) * s,
        # self.v of AttenSeq2Seq is dead code (its output is overwritten) -> omitted
    }

    xq = jax.random.normal(ks[13], (N, inc), f32)   # input_Q.F
    xh = jax.random.normal(ks[14], (N, inc), f32)   # input_H.F

    out = multi_head_attention(xq, xh, params, n_heads=n_heads,
                               hidden_dim=hidden_dim)
    out = jax.block_until_ready(out)

    ref = jax.block_until_ready(reference(xq, xh, params, H, D))
    np.testing.assert_allclose(np.asarray(out), np.asarray(ref),
                               rtol=2e-3, atol=2e-3)

    print("KERNEL_OK")
</pallas_src>

<mosaic_0001>
module attributes {stable_mosaic.version = 11 : i64} {
  func.func @_fused_mha_kernel(%arg0: i32, %arg1: memref<8x32xf32, #tpu.memory_space<vmem>>, %arg2: memref<8x32xf32, #tpu.memory_space<vmem>>, %arg3: memref<32x64xf32, #tpu.memory_space<vmem>>, %arg4: memref<32x64xf32, #tpu.memory_space<vmem>>, %arg5: memref<1x64xf32, #tpu.memory_space<vmem>>, %arg6: memref<1x64xf32, #tpu.memory_space<vmem>>, %arg7: memref<64x64xf32, #tpu.memory_space<vmem>>, %arg8: memref<64x64xf32, #tpu.memory_space<vmem>>, %arg9: memref<1x64xf32, #tpu.memory_space<vmem>>, %arg10: memref<64x64xf32, #tpu.memory_space<vmem>>, %arg11: memref<64x64xf32, #tpu.memory_space<vmem>>, %arg12: memref<1x64xf32, #tpu.memory_space<vmem>>, %arg13: memref<8x8x32xf32, #tpu.memory_space<vmem>>, %arg14: memref<1x32xf32, #tpu.memory_space<vmem>>, %arg15: memref<1x32xf32, #tpu.memory_space<vmem>>, %arg16: memref<8x32xf32, #tpu.memory_space<vmem>>) attributes {dimension_semantics = [#tpu.dimension_semantics<arbitrary>], iteration_bounds = array<i64: 1>, scalar_prefetch = 0 : i64, scratch_operands = 0 : i64, tpu.core_type = #tpu.core_type<tc>, window_params = [{pipeline_mode = #tpu.pipeline_mode<synchronous>, transform_indices = @transform_0, window_bounds = array<i64: 8, 32>}, {pipeline_mode = #tpu.pipeline_mode<synchronous>, transform_indices = @transform_1, window_bounds = array<i64: 8, 32>}, {pipeline_mode = #tpu.pipeline_mode<synchronous>, transform_indices = @transform_2, window_bounds = array<i64: 32, 64>}, {pipeline_mode = #tpu.pipeline_mode<synchronous>, transform_indices = @transform_3, window_bounds = array<i64: 32, 64>}, {pipeline_mode = #tpu.pipeline_mode<synchronous>, transform_indices = @transform_4, window_bounds = array<i64: 1, 64>}, {pipeline_mode = #tpu.pipeline_mode<synchronous>, transform_indices = @transform_5, window_bounds = array<i64: 1, 64>}, {pipeline_mode = #tpu.pipeline_mode<synchronous>, transform_indices = @transform_6, window_bounds = array<i64: 64, 64>}, {pipeline_mode = #tpu.pipeline_mode<synchronous>, transform_indices = @transform_7, window_bounds = array<i64: 64, 64>}, {pipeline_mode = #tpu.pipeline_mode<synchronous>, transform_indices = @transform_8, window_bounds = array<i64: 1, 64>}, {pipeline_mode = #tpu.pipeline_mode<synchronous>, transform_indices = @transform_9, window_bounds = array<i64: 64, 64>}, {pipeline_mode = #tpu.pipeline_mode<synchronous>, transform_indices = @transform_10, window_bounds = array<i64: 64, 64>}, {pipeline_mode = #tpu.pipeline_mode<synchronous>, transform_indices = @transform_11, window_bounds = array<i64: 1, 64>}, {pipeline_mode = #tpu.pipeline_mode<synchronous>, transform_indices = @transform_12, window_bounds = array<i64: 8, 8, 32>}, {pipeline_mode = #tpu.pipeline_mode<synchronous>, transform_indices = @transform_13, window_bounds = array<i64: 1, 32>}, {pipeline_mode = #tpu.pipeline_mode<synchronous>, transform_indices = @transform_14, window_bounds = array<i64: 1, 32>}, {pipeline_mode = #tpu.pipeline_mode<synchronous>, transform_indices = @transform_15, window_bounds = array<i64: 8, 32>}]} {
    %c0 = arith.constant 0 : index
    %c0_0 = arith.constant 0 : index
    %0 = vector.load %arg1[%c0, %c0_0] : memref<8x32xf32, #tpu.memory_space<vmem>>, vector<8x32xf32>
    %c0_1 = arith.constant 0 : index
    %c0_2 = arith.constant 0 : index
    %1 = vector.load %arg3[%c0_1, %c0_2] : memref<32x64xf32, #tpu.memory_space<vmem>>, vector<32x64xf32>
    %cst = arith.constant dense<0.000000e+00> : vector<8x64xf32>
    %2 = tpu.matmul %0, %1, %cst {dimension_numbers = #tpu.dot_dimension_numbers<[1], [0], [0], [1], [0, 0, 1, 1], [], []>} : vector<8x32xf32>, vector<32x64xf32>, vector<8x64xf32> -> vector<8x64xf32>
    %c0_3 = arith.constant 0 : index
    %c0_4 = arith.constant 0 : index
    %3 = vector.load %arg5[%c0_3, %c0_4] : memref<1x64xf32, #tpu.memory_space<vmem>>, vector<1x64xf32>
    %4 = vector.broadcast %3 : vector<1x64xf32> to vector<8x64xf32>
    %5 = arith.addf %2, %4 : vector<8x64xf32>
    %c0_5 = arith.constant 0 : index
    %c0_6 = arith.constant 0 : index
    %6 = vector.load %arg2[%c0_5, %c0_6] : memref<8x32xf32, #tpu.memory_space<vmem>>, vector<8x32xf32>
    %c0_7 = arith.constant 0 : index
    %c0_8 = arith.constant 0 : index
    %7 = vector.load %arg4[%c0_7, %c0_8] : memref<32x64xf32, #tpu.memory_space<vmem>>, vector<32x64xf32>
    %cst_9 = arith.constant dense<0.000000e+00> : vector<8x64xf32>
    %8 = tpu.matmul %6, %7, %cst_9 {dimension_numbers = #tpu.dot_dimension_numbers<[1], [0], [0], [1], [0, 0, 1, 1], [], []>} : vector<8x32xf32>, vector<32x64xf32>, vector<8x64xf32> -> vector<8x64xf32>
    %c0_10 = arith.constant 0 : index
    %c0_11 = arith.constant 0 : index
    %9 = vector.load %arg6[%c0_10, %c0_11] : memref<1x64xf32, #tpu.memory_space<vmem>>, vector<1x64xf32>
    %10 = vector.broadcast %9 : vector<1x64xf32> to vector<8x64xf32>
    %11 = arith.addf %8, %10 : vector<8x64xf32>
    %c0_12 = arith.constant 0 : index
    %c0_13 = arith.constant 0 : index
    %12 = vector.load %arg7[%c0_12, %c0_13] : memref<64x64xf32, #tpu.memory_space<vmem>>, vector<64x64xf32>
    %cst_14 = arith.constant dense<0.000000e+00> : vector<8x64xf32>
    %13 = tpu.matmul %11, %12, %cst_14 {dimension_numbers = #tpu.dot_dimension_numbers<[1], [0], [0], [1], [0, 0, 1, 1], [], []>} : vector<8x64xf32>, vector<64x64xf32>, vector<8x64xf32> -> vector<8x64xf32>
    %c0_15 = arith.constant 0 : index
    %c0_16 = arith.constant 0 : index
    %14 = vector.load %arg8[%c0_15, %c0_16] : memref<64x64xf32, #tpu.memory_space<vmem>>, vector<64x64xf32>
    %cst_17 = arith.constant dense<0.000000e+00> : vector<8x64xf32>
    %15 = tpu.matmul %5, %14, %cst_17 {dimension_numbers = #tpu.dot_dimension_numbers<[1], [0], [0], [1], [0, 0, 1, 1], [], []>} : vector<8x64xf32>, vector<64x64xf32>, vector<8x64xf32> -> vector<8x64xf32>
    %16 = arith.addf %13, %15 : vector<8x64xf32>
    %c0_18 = arith.constant 0 : index
    %c0_19 = arith.constant 0 : index
    %17 = vector.load %arg9[%c0_18, %c0_19] : memref<1x64xf32, #tpu.memory_space<vmem>>, vector<1x64xf32>
    %18 = vector.broadcast %17 : vector<1x64xf32> to vector<8x64xf32>
    %19 = arith.addf %16, %18 : vector<8x64xf32>
    %20 = math.tanh %19 : vector<8x64xf32>
    %cst_20 = arith.constant dense<0xFF800000> : vector<64xf32>
    %21 = vector.multi_reduction <maximumf>, %20, %cst_20 [0] : vector<8x64xf32> to vector<64xf32>
    %22 = vector.shape_cast %21 : vector<64xf32> to vector<1x64xf32>
    %23 = vector.broadcast %22 : vector<1x64xf32> to vector<8x64xf32>
    %24 = arith.subf %20, %23 : vector<8x64xf32>
    %25 = math.exp %24 : vector<8x64xf32>
    %cst_21 = arith.constant dense<0.000000e+00> : vector<64xf32>
    %26 = vector.multi_reduction <add>, %25, %cst_21 [0] : vector<8x64xf32> to vector<64xf32>
    %27 = vector.shape_cast %26 : vector<64xf32> to vector<1x64xf32>
    %28 = tpu.reciprocal %27 {approx = true} : vector<1x64xf32> -> vector<1x64xf32>
    %29 = vector.broadcast %28 : vector<1x64xf32> to vector<8x64xf32>
    %30 = arith.mulf %25, %29 : vector<8x64xf32>
    %31 = arith.mulf %30, %11 : vector<8x64xf32>
    %c0_22 = arith.constant 0 : index
    %c0_23 = arith.constant 0 : index
    %32 = vector.load %arg10[%c0_22, %c0_23] : memref<64x64xf32, #tpu.memory_space<vmem>>, vector<64x64xf32>
    %cst_24 = arith.constant dense<0.000000e+00> : vector<8x64xf32>
    %33 = tpu.matmul %5, %32, %cst_24 {dimension_numbers = #tpu.dot_dimension_numbers<[1], [0], [0], [1], [0, 0, 1, 1], [], []>} : vector<8x64xf32>, vector<64x64xf32>, vector<8x64xf32> -> vector<8x64xf32>
    %c0_25 = arith.constant 0 : index
    %c0_26 = arith.constant 0 : index
    %34 = vector.load %arg11[%c0_25, %c0_26] : memref<64x64xf32, #tpu.memory_space<vmem>>, vector<64x64xf32>
    %cst_27 = arith.constant dense<0.000000e+00> : vector<8x64xf32>
    %35 = tpu.matmul %31, %34, %cst_27 {dimension_numbers = #tpu.dot_dimension_numbers<[1], [0], [0], [1], [0, 0, 1, 1], [], []>} : vector<8x64xf32>, vector<64x64xf32>, vector<8x64xf32> -> vector<8x64xf32>
    %36 = arith.addf %33, %35 : vector<8x64xf32>
    %c0_28 = arith.constant 0 : index
    %c0_29 = arith.constant 0 : index
    %37 = vector.load %arg12[%c0_28, %c0_29] : memref<1x64xf32, #tpu.memory_space<vmem>>, vector<1x64xf32>
    %38 = vector.broadcast %37 : vector<1x64xf32> to vector<8x64xf32>
    %39 = arith.addf %36, %38 : vector<8x64xf32>
    %40 = math.tanh %39 : vector<8x64xf32>
    %41 = tpu.transpose %40, [1, 0] : vector<8x64xf32> -> vector<64x8xf32>
    %42 = vector.extract_strided_slice %41 {offsets = [0, 0], sizes = [8, 8], strides = [1, 1]} : vector<64x8xf32> to vector<8x8xf32>
    %c0_30 = arith.constant 0 : index
    %c0_31 = arith.constant 0 : index
    %c0_32 = arith.constant 0 : index
    %43 = vector.load %arg13[%c0_30, %c0_31, %c0_32] : memref<8x8x32xf32, #tpu.memory_space<vmem>>, vector<1x8x32xf32>
    %44 = vector.shape_cast %43 : vector<1x8x32xf32> to vector<8x32xf32>
    %cst_33 = arith.constant dense<0.000000e+00> : vector<8x32xf32>
    %45 = tpu.matmul %42, %44, %cst_33 {dimension_numbers = #tpu.dot_dimension_numbers<[1], [0], [0], [1], [0, 0, 1, 1], [], []>} : vector<8x8xf32>, vector<8x32xf32>, vector<8x32xf32> -> vector<8x32xf32>
    %46 = vector.extract_strided_slice %41 {offsets = [8, 0], sizes = [8, 8], strides = [1, 1]} : vector<64x8xf32> to vector<8x8xf32>
    %c1 = arith.constant 1 : index
    %c0_34 = arith.constant 0 : index
    %c0_35 = arith.constant 0 : index
    %47 = vector.load %arg13[%c1, %c0_34, %c0_35] : memref<8x8x32xf32, #tpu.memory_space<vmem>>, vector<1x8x32xf32>
    %48 = vector.shape_cast %47 : vector<1x8x32xf32> to vector<8x32xf32>
    %cst_36 = arith.constant dense<0.000000e+00> : vector<8x32xf32>
    %49 = tpu.matmul %46, %48, %cst_36 {dimension_numbers = #tpu.dot_dimension_numbers<[1], [0], [0], [1], [0, 0, 1, 1], [], []>} : vector<8x8xf32>, vector<8x32xf32>, vector<8x32xf32> -> vector<8x32xf32>
    %50 = arith.addf %45, %49 : vector<8x32xf32>
    %51 = vector.extract_strided_slice %41 {offsets = [16, 0], sizes = [8, 8], strides = [1, 1]} : vector<64x8xf32> to vector<8x8xf32>
    %c2 = arith.constant 2 : index
    %c0_37 = arith.constant 0 : index
    %c0_38 = arith.constant 0 : index
    %52 = vector.load %arg13[%c2, %c0_37, %c0_38] : memref<8x8x32xf32, #tpu.memory_space<vmem>>, vector<1x8x32xf32>
    %53 = vector.shape_cast %52 : vector<1x8x32xf32> to vector<8x32xf32>
    %cst_39 = arith.constant dense<0.000000e+00> : vector<8x32xf32>
    %54 = tpu.matmul %51, %53, %cst_39 {dimension_numbers = #tpu.dot_dimension_numbers<[1], [0], [0], [1], [0, 0, 1, 1], [], []>} : vector<8x8xf32>, vector<8x32xf32>, vector<8x32xf32> -> vector<8x32xf32>
    %55 = arith.addf %50, %54 : vector<8x32xf32>
    %56 = vector.extract_strided_slice %41 {offsets = [24, 0], sizes = [8, 8], strides = [1, 1]} : vector<64x8xf32> to vector<8x8xf32>
    %c3 = arith.constant 3 : index
    %c0_40 = arith.constant 0 : index
    %c0_41 = arith.constant 0 : index
    %57 = vector.load %arg13[%c3, %c0_40, %c0_41] : memref<8x8x32xf32, #tpu.memory_space<vmem>>, vector<1x8x32xf32>
    %58 = vector.shape_cast %57 : vector<1x8x32xf32> to vector<8x32xf32>
    %cst_42 = arith.constant dense<0.000000e+00> : vector<8x32xf32>
    %59 = tpu.matmul %56, %58, %cst_42 {dimension_numbers = #tpu.dot_dimension_numbers<[1], [0], [0], [1], [0, 0, 1, 1], [], []>} : vector<8x8xf32>, vector<8x32xf32>, vector<8x32xf32> -> vector<8x32xf32>
    %60 = arith.addf %55, %59 : vector<8x32xf32>
    %61 = vector.extract_strided_slice %41 {offsets = [32, 0], sizes = [8, 8], strides = [1, 1]} : vector<64x8xf32> to vector<8x8xf32>
    %c4 = arith.constant 4 : index
    %c0_43 = arith.constant 0 : index
    %c0_44 = arith.constant 0 : index
    %62 = vector.load %arg13[%c4, %c0_43, %c0_44] : memref<8x8x32xf32, #tpu.memory_space<vmem>>, vector<1x8x32xf32>
    %63 = vector.shape_cast %62 : vector<1x8x32xf32> to vector<8x32xf32>
    %cst_45 = arith.constant dense<0.000000e+00> : vector<8x32xf32>
    %64 = tpu.matmul %61, %63, %cst_45 {dimension_numbers = #tpu.dot_dimension_numbers<[1], [0], [0], [1], [0, 0, 1, 1], [], []>} : vector<8x8xf32>, vector<8x32xf32>, vector<8x32xf32> -> vector<8x32xf32>
    %65 = arith.addf %60, %64 : vector<8x32xf32>
    %66 = vector.extract_strided_slice %41 {offsets = [40, 0], sizes = [8, 8], strides = [1, 1]} : vector<64x8xf32> to vector<8x8xf32>
    %c5 = arith.constant 5 : index
    %c0_46 = arith.constant 0 : index
    %c0_47 = arith.constant 0 : index
    %67 = vector.load %arg13[%c5, %c0_46, %c0_47] : memref<8x8x32xf32, #tpu.memory_space<vmem>>, vector<1x8x32xf32>
    %68 = vector.shape_cast %67 : vector<1x8x32xf32> to vector<8x32xf32>
    %cst_48 = arith.constant dense<0.000000e+00> : vector<8x32xf32>
    %69 = tpu.matmul %66, %68, %cst_48 {dimension_numbers = #tpu.dot_dimension_numbers<[1], [0], [0], [1], [0, 0, 1, 1], [], []>} : vector<8x8xf32>, vector<8x32xf32>, vector<8x32xf32> -> vector<8x32xf32>
    %70 = arith.addf %65, %69 : vector<8x32xf32>
    %71 = vector.extract_strided_slice %41 {offsets = [48, 0], sizes = [8, 8], strides = [1, 1]} : vector<64x8xf32> to vector<8x8xf32>
    %c6 = arith.constant 6 : index
    %c0_49 = arith.constant 0 : index
    %c0_50 = arith.constant 0 : index
    %72 = vector.load %arg13[%c6, %c0_49, %c0_50] : memref<8x8x32xf32, #tpu.memory_space<vmem>>, vector<1x8x32xf32>
    %73 = vector.shape_cast %72 : vector<1x8x32xf32> to vector<8x32xf32>
    %cst_51 = arith.constant dense<0.000000e+00> : vector<8x32xf32>
    %74 = tpu.matmul %71, %73, %cst_51 {dimension_numbers = #tpu.dot_dimension_numbers<[1], [0], [0], [1], [0, 0, 1, 1], [], []>} : vector<8x8xf32>, vector<8x32xf32>, vector<8x32xf32> -> vector<8x32xf32>
    %75 = arith.addf %70, %74 : vector<8x32xf32>
    %76 = vector.extract_strided_slice %41 {offsets = [56, 0], sizes = [8, 8], strides = [1, 1]} : vector<64x8xf32> to vector<8x8xf32>
    %c7 = arith.constant 7 : index
    %c0_52 = arith.constant 0 : index
    %c0_53 = arith.constant 0 : index
    %77 = vector.load %arg13[%c7, %c0_52, %c0_53] : memref<8x8x32xf32, #tpu.memory_space<vmem>>, vector<1x8x32xf32>
    %78 = vector.shape_cast %77 : vector<1x8x32xf32> to vector<8x32xf32>
    %cst_54 = arith.constant dense<0.000000e+00> : vector<8x32xf32>
    %79 = tpu.matmul %76, %78, %cst_54 {dimension_numbers = #tpu.dot_dimension_numbers<[1], [0], [0], [1], [0, 0, 1, 1], [], []>} : vector<8x8xf32>, vector<8x32xf32>, vector<8x32xf32> -> vector<8x32xf32>
    %80 = arith.addf %75, %79 : vector<8x32xf32>
    %81 = arith.addf %80, %0 : vector<8x32xf32>
    %cst_55 = arith.constant dense<0.000000e+00> : vector<8xf32>
    %82 = vector.multi_reduction <add>, %81, %cst_55 [1] : vector<8x32xf32> to vector<8xf32>
    %83 = vector.shape_cast %82 : vector<8xf32> to vector<8x1xf32>
    %cst_56 = arith.constant 3.200000e+01 : f32
    %84 = vector.broadcast %cst_56 : f32 to vector<8x1xf32>
    %85 = arith.divf %83, %84 : vector<8x1xf32>
    %86 = vector.broadcast %85 : vector<8x1xf32> to vector<8x32xf32>
    %87 = arith.subf %81, %86 : vector<8x32xf32>
    %88 = arith.mulf %87, %87 : vector<8x32xf32>
    %cst_57 = arith.constant dense<0.000000e+00> : vector<8xf32>
    %89 = vector.multi_reduction <add>, %88, %cst_57 [1] : vector<8x32xf32> to vector<8xf32>
    %90 = vector.shape_cast %89 : vector<8xf32> to vector<8x1xf32>
    %cst_58 = arith.constant 3.200000e+01 : f32
    %91 = vector.broadcast %cst_58 : f32 to vector<8x1xf32>
    %92 = arith.divf %90, %91 : vector<8x1xf32>
    %93 = vector.broadcast %85 : vector<8x1xf32> to vector<8x32xf32>
    %94 = arith.subf %81, %93 : vector<8x32xf32>
    %cst_59 = arith.constant 9.99999974E-6 : f32
    %95 = vector.broadcast %cst_59 : f32 to vector<8x1xf32>
    %96 = arith.addf %92, %95 : vector<8x1xf32>
    %97 = math.rsqrt %96 : vector<8x1xf32>
    %98 = vector.broadcast %97 : vector<8x1xf32> to vector<8x32xf32>
    %99 = arith.mulf %94, %98 : vector<8x32xf32>
    %c0_60 = arith.constant 0 : index
    %c0_61 = arith.constant 0 : index
    %100 = vector.load %arg14[%c0_60, %c0_61] : memref<1x32xf32, #tpu.memory_space<vmem>>, vector<1x32xf32>
    %101 = vector.broadcast %100 : vector<1x32xf32> to vector<8x32xf32>
    %102 = arith.mulf %99, %101 : vector<8x32xf32>
    %c0_62 = arith.constant 0 : index
    %c0_63 = arith.constant 0 : index
    %103 = vector.load %arg15[%c0_62, %c0_63] : memref<1x32xf32, #tpu.memory_space<vmem>>, vector<1x32xf32>
    %104 = vector.broadcast %103 : vector<1x32xf32> to vector<8x32xf32>
    %105 = arith.addf %102, %104 : vector<8x32xf32>
    %c0_64 = arith.constant 0 : index
    %c0_65 = arith.constant 0 : index
    %106 = vector.load %arg16[%c0_64, %c0_65] : memref<8x32xf32, #tpu.memory_space<vmem>>, vector<8x32xf32>
    tpu.vector_store %arg16[%c0_64, %c0_65], %105 {strides = array<i32>} : memref<8x32xf32, #tpu.memory_space<vmem>>, vector<8x32xf32>,
    return
  }
  func.func @transform_0(%arg0: i32) -> (i32, i32) {
    %c0_i32 = arith.constant 0 : i32
    %c0_i32_0 = arith.constant 0 : i32
    %c0_i32_1 = arith.constant 0 : i32
    return %c0_i32, %c0_i32_0 : i32, i32
  }
  func.func @transform_1(%arg0: i32) -> (i32, i32) {
    %c0_i32 = arith.constant 0 : i32
    %c0_i32_0 = arith.constant 0 : i32
    %c0_i32_1 = arith.constant 0 : i32
    return %c0_i32, %c0_i32_0 : i32, i32
  }
  func.func @transform_2(%arg0: i32) -> (i32, i32) {
    %c0_i32 = arith.constant 0 : i32
    %c0_i32_0 = arith.constant 0 : i32
    %c0_i32_1 = arith.constant 0 : i32
    return %c0_i32, %c0_i32_0 : i32, i32
  }
  func.func @transform_3(%arg0: i32) -> (i32, i32) {
    %c0_i32 = arith.constant 0 : i32
    %c0_i32_0 = arith.constant 0 : i32
    %c0_i32_1 = arith.constant 0 : i32
    return %c0_i32, %c0_i32_0 : i32, i32
  }
  func.func @transform_4(%arg0: i32) -> (i32, i32) {
    %c0_i32 = arith.constant 0 : i32
    %c0_i32_0 = arith.constant 0 : i32
    %c0_i32_1 = arith.constant 0 : i32
    return %c0_i32, %c0_i32_0 : i32, i32
  }
  func.func @transform_5(%arg0: i32) -> (i32, i32) {
    %c0_i32 = arith.constant 0 : i32
    %c0_i32_0 = arith.constant 0 : i32
    %c0_i32_1 = arith.constant 0 : i32
    return %c0_i32, %c0_i32_0 : i32, i32
  }
  func.func @transform_6(%arg0: i32) -> (i32, i32) {
    %c0_i32 = arith.constant 0 : i32
    %c0_i32_0 = arith.constant 0 : i32
    %c0_i32_1 = arith.constant 0 : i32
    return %c0_i32, %c0_i32_0 : i32, i32
  }
  func.func @transform_7(%arg0: i32) -> (i32, i32) {
    %c0_i32 = arith.constant 0 : i32
    %c0_i32_0 = arith.constant 0 : i32
    %c0_i32_1 = arith.constant 0 : i32
    return %c0_i32, %c0_i32_0 : i32, i32
  }
  func.func @transform_8(%arg0: i32) -> (i32, i32) {
    %c0_i32 = arith.constant 0 : i32
    %c0_i32_0 = arith.constant 0 : i32
    %c0_i32_1 = arith.constant 0 : i32
    return %c0_i32, %c0_i32_0 : i32, i32
  }
  func.func @transform_9(%arg0: i32) -> (i32, i32) {
    %c0_i32 = arith.constant 0 : i32
    %c0_i32_0 = arith.constant 0 : i32
    %c0_i32_1 = arith.constant 0 : i32
    return %c0_i32, %c0_i32_0 : i32, i32
  }
  func.func @transform_10(%arg0: i32) -> (i32, i32) {
    %c0_i32 = arith.constant 0 : i32
    %c0_i32_0 = arith.constant 0 : i32
    %c0_i32_1 = arith.constant 0 : i32
    return %c0_i32, %c0_i32_0 : i32, i32
  }
  func.func @transform_11(%arg0: i32) -> (i32, i32) {
    %c0_i32 = arith.constant 0 : i32
    %c0_i32_0 = arith.constant 0 : i32
    %c0_i32_1 = arith.constant 0 : i32
    return %c0_i32, %c0_i32_0 : i32, i32
  }
  func.func @transform_12(%arg0: i32) -> (i32, i32, i32) {
    %c0_i32 = arith.constant 0 : i32
    %c0_i32_0 = arith.constant 0 : i32
    %c0_i32_1 = arith.constant 0 : i32
    %c0_i32_2 = arith.constant 0 : i32
    return %c0_i32, %c0_i32_0, %c0_i32_1 : i32, i32, i32
  }
  func.func @transform_13(%arg0: i32) -> (i32, i32) {
    %c0_i32 = arith.constant 0 : i32
    %c0_i32_0 = arith.constant 0 : i32
    %c0_i32_1 = arith.constant 0 : i32
    return %c0_i32, %c0_i32_0 : i32, i32
  }
  func.func @transform_14(%arg0: i32) -> (i32, i32) {
    %c0_i32 = arith.constant 0 : i32
    %c0_i32_0 = arith.constant 0 : i32
    %c0_i32_1 = arith.constant 0 : i32
    return %c0_i32, %c0_i32_0 : i32, i32
  }
  func.func @transform_15(%arg0: i32) -> (i32, i32) {
    %c0_i32 = arith.constant 0 : i32
    %c0_i32_0 = arith.constant 0 : i32
    %c0_i32_1 = arith.constant 0 : i32
    return %c0_i32, %c0_i32_0 : i32, i32
  }
}

</mosaic_0001>

<bundles_post_ra>
// kernel: multi_head_attention.1
= control target key start
LH: loop header
LB: loop body
LE: loop exit
PB: predicated region body
PF: predicated region fallthrough
CT: control target
= control target key end

     0   :  { %v1591_v3 = vmov 0.0|0.0   ;;  %vm1592_vm0 = vmmov 0   ;;  %v1593_v11 = vmov 0.0   ;;  %vm63_vm1 = vcmask 261120   ;;  %s1938_s0 = inlined_call_operand.vmem [shape: f32[8,32], index: 0, kind: input, shape index: {}]   ;;  %s1939_s1 = inlined_call_operand.vmem [shape: f32[8,32], index: 1, kind: input, shape index: {}]   ;;  %s1940_s2 = inlined_call_operand.vmem [shape: f32[32,64], index: 2, kind: input, shape index: {}]   ;;  %s1941_s3 = inlined_call_operand.vmem [shape: f32[32,64], index: 3, kind: input, shape index: {}]   ;;  %s1942_s4 = inlined_call_operand.vmem [shape: f32[1,64], index: 4, kind: input, shape index: {}]   ;;  %s1943_s5 = inlined_call_operand.vmem [shape: f32[1,64], index: 5, kind: input, shape index: {}]   ;;  %s1944_s6 = inlined_call_operand.vmem [shape: f32[64,64], index: 6, kind: input, shape index: {}]   ;;  %s1945_s7 = inlined_call_operand.vmem [shape: f32[64,64], index: 7, kind: input, shape index: {}]   ;;  %s1946_s8 = inlined_call_operand.vmem [shape: f32[1,64], index: 8, kind: input, shape index: {}]   ;;  %s1947_s9 = inlined_call_operand.vmem [shape: f32[64,64], index: 9, kind: input, shape index: {}]   ;;  %s1948_s10 = inlined_call_operand.vmem [shape: f32[64,64], index: 10, kind: input, shape index: {}]   ;;  %s1949_s11 = inlined_call_operand.vmem [shape: f32[1,64], index: 11, kind: input, shape index: {}]   ;;  %s1950_s12 = inlined_call_operand.vmem [shape: f32[8,8,32], index: 12, kind: input, shape index: {}]   ;;  %s1951_s13 = inlined_call_operand.vmem [shape: f32[1,32], index: 13, kind: input, shape index: {}]   ;;  %s1952_s14 = inlined_call_operand.vmem [shape: f32[1,32], index: 14, kind: input, shape index: {}]   ;;  %s1953_s15 = inlined_call_operand.hbm [shape: f32[8,32], index: 15, kind: output, shape index: {}]  }
   0x1   :  { %v52_v0 = vld [vmem:[%s1940_s2] sm:$0xff]  ;;  %v53_v1 = vld [vmem:[%s1940_s2 + $0x8] sm:$0xff]  ;;  %1493 = vmatprep.subr.bf16.mxu0 %v1591_v3  ;;  %1499 = vmatprep.subr.bf16.mxu1 %v1591_v3  ;;  %v54_v6 = vld [vmem:[%s1940_s2 + $0x10] sm:$0xff] }
   0x2   :  { %v138_v2 = vld [vmem:[%s1941_s3] sm:$0xff]  ;;  %v1494_v4 = vpack.c.bf16 %v53_v1, %v52_v0  ;;  %v139_v5 = vld [vmem:[%s1941_s3 + $0x8] sm:$0xff]  ;;  %v55_v7 = vld [vmem:[%s1940_s2 + $0x18] sm:$0xff]  ;;  %1363 = vmatprep.mubr.msk.f32.mxu0 %vm1592_vm0, %v1593_v11  ;;  %1374 = vmatprep.mubr.msk.f32.mxu1 %vm1592_vm0, %v1593_v11 }
   0x3   :  { %v1500_v8 = vpack.c.bf16 %v139_v5, %v138_v2  ;;  %v140_v9 = vld [vmem:[%s1941_s3 + $0x10] sm:$0xff]  ;;  %v141_v10 = vld [vmem:[%s1941_s3 + $0x18] sm:$0xff]  ;;  %v1497_v12 = vpack.c.bf16 %v55_v7, %v54_v6  ;;  %v230_v14 = vld [vmem:[%s1945_s7] sm:$0xff] }
   0x4   :  { %1495 = vmatpush3.bf16.msra.mxu0 %v1494_v4  ;;  %v1503_v13 = vpack.c.bf16 %v141_v10, %v140_v9  ;;  %v231_v15 = vld [vmem:[%s1945_s7 + $0x8] sm:$0xff]  ;;  %v222_v16 = vld [vmem:[%s1944_s6] sm:$0xff]  ;;  %v232_v22 = vld [vmem:[%s1945_s7 + $0x10] sm:$0xff] }
   0x5   :  { %1501 = vmatpush3.bf16.msra.mxu1 %v1500_v8  ;;  %1496 = vmatprep.subr.bf16.mxu0 %v1591_v3  ;;  %v223_v17 = vld [vmem:[%s1944_s6 + $0x8] sm:$0xff]  ;;  %v1722_v18 = vld [vmem:[%s1938_s0] sm:$0xff]  ;;  %v1506_v20 = vpack.c.bf16 %v231_v15, %v230_v14  ;;  %v233_v23 = vld [vmem:[%s1945_s7 + $0x18] sm:$0xff] }
   0x6   :  { %1502 = vmatprep.subr.bf16.mxu1 %v1591_v3  ;;  %v137_v19 = vld [vmem:[%s1939_s1] sm:$0xff]  ;;  %v1518_v21 = vpack.c.bf16 %v223_v17, %v222_v16 }
   0x8   :  { %1498 = vmatpush3.bf16.msra.mxu0 %v1497_v12 }
   0x9   :  { %1504 = vmatpush3.bf16.msra.mxu1 %v1503_v13  ;;  %1505 = vmatprep.subr.bf16.mxu0 %v1591_v3 }
   0xa   :  { %20 = vsyncpa [#allocation3], 0  ;;  %1517 = vmatprep.subr.bf16.mxu1 %v1591_v3  ;;  %v224_v24 = vld [vmem:[%s1944_s6 + $0x10] sm:$0xff]  ;;  %v225_v25 = vld [vmem:[%s1944_s6 + $0x18] sm:$0xff]  ;;  %v1509_v26 = vpack.c.bf16 %v233_v23, %v232_v22  ;;  %vm238_vm2 = vcmask 523264   ;;  %vm617_vm3 = vcmask 64512  }
   0xb   :  { %1364 = vmatmul.mubr.msk.f32.vlgmr.msra.gmra.mrb[0].mxu0 %vm63_vm1, %v1722_v18  ;;  %v1521_v27 = vpack.c.bf16 %v225_v25, %v224_v24  ;;  %v234_v28 = vld [vmem:[%s1945_s7 + $0x20] sm:$0xff]  ;;  %v235_v29 = vld [vmem:[%s1945_s7 + $0x28] sm:$0xff]  ;;  %v228_v34 = vld [vmem:[%s1944_s6 + $0x30] sm:$0xff] }
   0xc   :  { %1375 = vmatmul.mubr.msk.f32.vlgmr.msra.gmra.mrb[0].mxu1 %vm63_vm1, %v137_v19  ;;  %1507 = vmatpush3.bf16.msra.mxu0 %v1506_v20  ;;  %v226_v30 = vld [vmem:[%s1944_s6 + $0x20] sm:$0xff]  ;;  %v227_v31 = vld [vmem:[%s1944_s6 + $0x28] sm:$0xff]  ;;  %v1512_v32 = vpack.c.bf16 %v235_v29, %v234_v28  ;;  %v229_v35 = vld [vmem:[%s1944_s6 + $0x38] sm:$0xff] }
   0xd   :  { %1519 = vmatpush3.bf16.msra.mxu1 %v1518_v21  ;;  %1508 = vmatprep.subr.bf16.mxu0 %v1591_v3  ;;  %v1524_v33 = vpack.c.bf16 %v227_v31, %v226_v30  ;;  %v1527_v36 = vpack.c.bf16 %v229_v35, %v228_v34  ;;  %v236_v37 = vld [vmem:[%s1945_s7 + $0x30] sm:$0xff]  ;;  %v237_v38 = vld [vmem:[%s1945_s7 + $0x38] sm:$0xff]  ;;  %v1266_v40 = vld [vmem:[%s1942_s4] ss:$0 sm:$0xff]  ;;  %s1594_s4 = smov [#allocation2]  }
   0xe   :  { %1520 = vmatprep.subr.bf16.mxu1 %v1591_v3  ;;  %1393 = vmatprep.mubr.msk.f32.mxu0 %vm1592_vm0, %v1593_v11  ;;  %v1515_v39 = vpack.c.bf16 %v237_v38, %v236_v37  ;;  %v414_v41 = vld [vmem:[%s1947_s9] sm:$0xff]  ;;  %v415_v42 = vld [vmem:[%s1947_s9 + $0x8] sm:$0xff]  ;;  %v416_v51 = vld [vmem:[%s1947_s9 + $0x10] sm:$0xff]  ;;  %s1258_s7 = sshll.u32 %s1594_s4, 4  ;;  %s1259_s7 = int_to_ptr.vmem [resolvable:$true] %s1258_s7 }
   0xf   :  { %1412 = vmatprep.mubr.msk.f32.mxu1 %vm1592_vm0, %v1593_v11  ;;  %v1268_v43 = vld [vmem:[%s1943_s5] ss:$0 sm:$0xff]  ;;  %v1542_v48 = vpack.c.bf16 %v415_v42, %v414_v41  ;;  %v417_v52 = vld [vmem:[%s1947_s9 + $0x18] sm:$0xff]  ;;  %v419_v55 = vld [vmem:[%s1947_s9 + $0x28] sm:$0xff]  ;;  %s1567_s22 = scalar_lea.vmem %s1259_s7, 128  ;;  %p1572_p1 = scmp.lt.s32.totalorder %s1259_s7, %s1259_s7 }
  0x10   :  { %1510 = vmatpush3.bf16.msra.mxu0 %v1509_v26  ;;  %v1545_v53 = vpack.c.bf16 %v417_v52, %v416_v51  ;;  %v418_v54 = vld [vmem:[%s1947_s9 + $0x20] sm:$0xff]  ;;  %v420_v57 = vld [vmem:[%s1947_s9 + $0x30] sm:$0xff]  ;;  %v421_v58 = vld [vmem:[%s1947_s9 + $0x38] sm:$0xff]  ;;  %p1568_p0 = scmp.ne.s32.totalorder %s1259_s7, %s1567_s22  ;;  %p1573_p2 = scmp.lt.s32.totalorder %s1567_s22, %s1567_s22 }
  0x11   :  { %1522 = vmatpush3.bf16.msra.mxu1 %v1521_v27  ;;  %1511 = vmatprep.subr.bf16.mxu0 %v1591_v3  ;;  %v1548_v56 = vpack.c.bf16 %v419_v55, %v418_v54  ;;  %v1551_v59 = vpack.c.bf16 %v421_v58, %v420_v57  ;;  %v422_v60 = vld [vmem:[%s1948_s10] sm:$0xff]  ;;  %v423_v61 = vld [vmem:[%s1948_s10 + $0x8] sm:$0xff]  ;;  %v424_v62 = vld [vmem:[%s1948_s10 + $0x10] sm:$0xff] }
  0x12   :  { %1523 = vmatprep.subr.bf16.mxu1 %v1591_v3  ;;  %v1530_v63 = vpack.c.bf16 %v423_v61, %v422_v60  ;;  %v425_v0 = vld [vmem:[%s1948_s10 + $0x18] sm:$0xff]  ;;  %v426_v2 = vld [vmem:[%s1948_s10 + $0x20] sm:$0xff]  ;;  %v427_v4 = vld [vmem:[%s1948_s10 + $0x28] sm:$0xff]  ;;  %p1574_p3 = por %p1573_p2, %p1572_p1 }
  0x13   :  { %v1533_v1 = vpack.c.bf16 %v425_v0, %v424_v62  ;;  %v1536_v5 = vpack.c.bf16 %v427_v4, %v426_v2  ;;  %v428_v6 = vld [vmem:[%s1948_s10 + $0x30] sm:$0xff]  ;;  %v429_v7 = vld [vmem:[%s1948_s10 + $0x38] sm:$0xff]  ;;  %v1272_v12 = vld [vmem:[%s1946_s8] ss:$0 sm:$0xff] }
  0x14   :  { %1513 = vmatpush3.bf16.msra.mxu0 %v1512_v32  ;;  %v1539_v8 = vpack.c.bf16 %v429_v7, %v428_v6  ;;  %v1275_v42 = vld [vmem:[%s1949_s11] ss:$0 sm:$0xff]  ;;  %v1285_v54 = vld [vmem:[%s1950_s12 + $0x28] sm:$0xff]  ;;  %v1289_v58 = vld [vmem:[%s1950_s12 + $0x38] sm:$0xff]  ;;  %p1575_p4 = pnand %p1574_p3, %p1568_p0 }
  0x15   :  { %1525 = vmatpush3.bf16.msra.mxu1 %v1524_v33  ;;  %1514 = vmatprep.subr.bf16.mxu0 %v1591_v3  ;;  %v1283_v52 = vld [vmem:[%s1950_s12 + $0x20] sm:$0xff] }
  0x16   :  { %1526 = vmatprep.subr.bf16.mxu1 %v1591_v3 }
  0x18   :  { %1516 = vmatpush3.bf16.msra.mxu0 %v1515_v39 }
  0x19   :  { %1528 = vmatpush3.bf16.msra.mxu1 %v1527_v36  ;;  %1529 = vmatprep.subr.bf16.mxu0 %v1591_v3 }
  0x1a   :  { %1541 = vmatprep.subr.bf16.mxu1 %v1591_v3 }
  0xde   :  { %v133_v44 = vpop.f32.mrb[0].mxu0 }
  0xdf   :  { %v134_v45 = vadd.f32 %v1266_v40, %v133_v44  ;;  %v218_v46 = vpop.f32.mrb[0].mxu1  ;;  %v1365_v47 = vpop.f32.mrb[1].mxu0  ;;  %v614_v40 = vld [vmem:[%s1950_s12] sm:$0xff] }
  0xe0   :  { %v1792_v49 = vadd.f32 %v1268_v43, %v218_v46  ;;  %v1376_v50 = vpop.f32.mrb[1].mxu1  ;;  %v1276_v47 = vld [vmem:[%s1950_s12 + $0x8] sm:$0xff] }
  0xe1   :  { %1394 = vmatmul.mubr.msk.f32.vlgmr.msra.gmra.mrb[2].mxu0 %vm238_vm2, %v134_v45  ;;  %v1279_v50 = vld [vmem:[%s1950_s12 + $0x10] sm:$0xff] }
  0xe2   :  { %1413 = vmatmul.mubr.msk.f32.vlgmr.msra.gmra.mrb[2].mxu1 %vm238_vm2, %v1792_v49  ;;  %1431 = vmatprep.mubr.msk.f32.mxu0 %vm1592_vm0, %v1593_v11 }
  0xe3   :  { %1543 = vmatpush3.bf16.msra.mxu1 %v1542_v48  ;;  %1450 = vmatprep.mubr.msk.f32.mxu1 %vm1592_vm0, %v1593_v11  ;;  %v1281_v48 = vld [vmem:[%s1950_s12 + $0x18] sm:$0xff] }
  0xe4   :  { %1544 = vmatprep.subr.bf16.mxu1 %v1591_v3  ;;  %1531 = vmatpush3.bf16.msra.mxu0 %v1530_v63 }
  0xe5   :  { %1532 = vmatprep.subr.bf16.mxu0 %v1591_v3 }
  0xe7   :  { %1546 = vmatpush3.bf16.msra.mxu1 %v1545_v53 }
  0xe8   :  { %1547 = vmatprep.subr.bf16.mxu1 %v1591_v3  ;;  %1534 = vmatpush3.bf16.msra.mxu0 %v1533_v1 }
  0xe9   :  { %1535 = vmatprep.subr.bf16.mxu0 %v1591_v3 }
  0xeb   :  { %1549 = vmatpush3.bf16.msra.mxu1 %v1548_v56  ;;  %v1287_v56 = vld [vmem:[%s1950_s12 + $0x30] sm:$0xff] }
  0xec   :  { %1550 = vmatprep.subr.bf16.mxu1 %v1591_v3  ;;  %1537 = vmatpush3.bf16.msra.mxu0 %v1536_v5 }
  0xed   :  { %1538 = vmatprep.subr.bf16.mxu0 %v1591_v3 }
  0xef   :  { %1552 = vmatpush3.bf16.msra.mxu1 %v1551_v59 }
  0xf0   :  { %1458 = vmatprep.subr.mxu1 %v1593_v11  ;;  %1540 = vmatpush3.bf16.msra.mxu0 %v1539_v8 }
  0xf1   :  { %1453 = vmatprep.subr.mxu0 %v1593_v11 }
  0xf2   :  { %1451 = vmatmul.mubr.msk.f32.vlgmr.msra.gmra.mrb[4].mxu1 %vm238_vm2, %v134_v45 }
  0xf3   :  { %1460 = vmatprep.mubr.msk.f32.mxu1 %vm1592_vm0, %v1593_v11  ;;  %1459 = vmatpush3.msra.mxu1 %v614_v40 }
  0xf4   :  { %1468 = vmatprep.subr.mxu1 %v1593_v11 }
 0x1b4   :  { %v308_v9 = vpop.f32.mrb[2].mxu0 }
 0x1b5   :  { %v381_v10 = vpop.f32.mrb[2].mxu1  ;;  %v1395_v13 = vpop.f32.mrb[3].mxu0 }
 0x1b6   :  { %v382_v14 = vadd.f32 %v381_v10, %v308_v9  ;;  %v1414_v15 = vpop.f32.mrb[3].mxu1 }
 0x1b8   :  { %v392_v16 = vadd.f32 %v1272_v12, %v382_v14 }
 0x1ba   :  { %1557 = vtanh.f32 %v392_v16 }
 0x1c4   :  { %v1558_v17 = vpop.eup %1557 }
 0x1c5   :  { %v394_v19 = vsel %vm238_vm2, %v1558_v17, -inf  ;;  %v569_v20 = vpop.f32.mrb[4].mxu1 }
 0x1c6   :  { %v395_v21 = vrot.slane %v394_v19, 4  ;;  %v1452_v3 = vpop.f32.mrb[5].mxu1 }
 0x1c8   :  { %v396_v22 = vmax.f32 %v394_v19, %v395_v21 }
 0x1ca   :  { %v397_v23 = vrot.slane %v396_v22, 2 }
 0x1cc   :  { %v398_v24 = vmax.f32 %v396_v22, %v397_v23 }
 0x1ce   :  { %v399_v25 = vrot.slane %v398_v24, 1 }
 0x1d0   :  { %v400_v26 = vmax.f32 %v398_v24, %v399_v25 }
 0x1d2   :  { %v401_v27 = vsub.f32 %v1558_v17, %v400_v26 }
 0x1d4   :  { %v402_v28 = vmul.f32 1.442695, %v401_v27 }
 0x1d6   :  { %1559 = vpow2.f32 %v402_v28 }
 0x1e0   :  { %v1560_v29 = vpop.eup %1559 }
 0x1e1   :  { %v404_v30 = vsel %vm238_vm2, %v1560_v29, 0.0 }
 0x1e2   :  { %v405_v31 = vrot.slane %v404_v30, 4 }
 0x1e4   :  { %v406_v32 = vadd.f32 %v405_v31, %v404_v30 }
 0x1e6   :  { %v407_v33 = vrot.slane %v406_v32, 2 }
 0x1e8   :  { %v408_v34 = vadd.f32 %v407_v33, %v406_v32  ;;  %v1291_v33 = vld [vmem:[%s1951_s13] ss:$0 sm:$0xff] }
 0x1ea   :  { %v409_v35 = vrot.slane %v408_v34, 1 }
 0x1ec   :  { %v410_v36 = vadd.f32 %v409_v35, %v408_v34  ;;  %v1292_v34 = vld [vmem:[%s1952_s14] ss:$0 sm:$0xff] }
 0x1ee   :  { %1561 = vrcp.f32 %v410_v36 }
 0x1f8   :  { %v1562_v37 = vpop.eup %1561 }
 0x1f9   :  { %v412_v38 = vmul.f32 %v1562_v37, %v1560_v29 }
 0x1fb   :  { %v413_v39 = vmul.f32 %v412_v38, %v1792_v49 }
 0x1fd   :  { %1432 = vmatmul.mubr.msk.f32.vlgmr.msra.gmra.mrb[4].mxu0 %vm238_vm2, %v413_v39 }
 0x1fe   :  { %1455 = vmatprep.mubr.msk.f32.mxu0 %vm1592_vm0, %v1593_v11  ;;  %1454 = vmatpush3.msra.mxu0 %v1276_v47 }
 0x1ff   :  { %1463 = vmatprep.subr.mxu0 %v1593_v11 }
 0x2d0   :  { %v499_v41 = vpop.f32.mrb[4].mxu0 }
 0x2d1   :  { %v570_v43 = vadd.f32 %v569_v20, %v499_v41  ;;  %v1433_v44 = vpop.f32.mrb[5].mxu0 }
 0x2d3   :  { %v580_v45 = vadd.f32 %v1275_v42, %v570_v43 }
 0x2d5   :  { %1563 = vtanh.f32 %v580_v45 }
 0x2df   :  { %v1564_v46 = vpop.eup %1563 }
 0x2e0   :  { %582 = vxpose.xlu0.b32.start.end [1/1] (short) (narrow) %v1564_v46, 64 }
 0x360   :  { %v598_v49 = vpop.trf.xlu0 }
 0x361   :  { %1461 = vmatmul.mubr.msk.f32.vlgmr.msra.gmra.mrb[6].mxu1 %vm617_vm3, %v598_v49 }
 0x362   :  { %1469 = vmatpush3.msra.mxu1 %v1281_v48  ;;  %1470 = vmatprep.mubr.msk.f32.mxu1 %vm1592_vm0, %v1593_v11 }
 0x363   :  { %1478 = vmatprep.subr.mxu1 %v1593_v11 }
 0x364   :  { %v599_v51 = vpop.trf.xlu0 }
 0x365   :  { %1456 = vmatmul.mubr.msk.f32.vlgmr.msra.gmra.mrb[6].mxu0 %vm617_vm3, %v599_v51 }
 0x366   :  { %1464 = vmatpush3.msra.mxu0 %v1279_v50  ;;  %1465 = vmatprep.mubr.msk.f32.mxu0 %vm1592_vm0, %v1593_v11 }
 0x367   :  { %1473 = vmatprep.subr.mxu0 %v1593_v11 }
 0x368   :  { %v600_v53 = vpop.trf.xlu0 }
 0x369   :  { %1466 = vmatmul.mubr.msk.f32.vlgmr.msra.gmra.mrb[8].mxu0 %vm617_vm3, %v600_v53 }
 0x36a   :  { %1474 = vmatpush3.msra.mxu0 %v1283_v52  ;;  %1475 = vmatprep.mubr.msk.f32.mxu0 %vm1592_vm0, %v1593_v11 }
 0x36b   :  { %1483 = vmatprep.subr.mxu0 %v1593_v11 }
 0x36c   :  { %v601_v55 = vpop.trf.xlu0 }
 0x36d   :  { %1471 = vmatmul.mubr.msk.f32.vlgmr.msra.gmra.mrb[8].mxu1 %vm617_vm3, %v601_v55 }
 0x36e   :  { %1479 = vmatpush3.msra.mxu1 %v1285_v54  ;;  %1480 = vmatprep.mubr.msk.f32.mxu1 %vm1592_vm0, %v1593_v11 }
 0x36f   :  { %1488 = vmatprep.subr.mxu1 %v1593_v11 }
 0x370   :  { %v602_v57 = vpop.trf.xlu0 }
 0x371   :  { %1476 = vmatmul.mubr.msk.f32.vlgmr.msra.gmra.mrb[10].mxu0 %vm617_vm3, %v602_v57 }
 0x372   :  { %1484 = vmatpush3.msra.mxu0 %v1287_v56  ;;  %1485 = vmatprep.mubr.msk.f32.mxu0 %vm1592_vm0, %v1593_v11 }
 0x374   :  { %v603_v59 = vpop.trf.xlu0 }
 0x375   :  { %1481 = vmatmul.mubr.msk.f32.vlgmr.msra.gmra.mrb[10].mxu1 %vm617_vm3, %v603_v59 }
 0x376   :  { %1489 = vmatpush3.msra.mxu1 %v1289_v58  ;;  %1490 = vmatprep.mubr.msk.f32.mxu1 %vm1592_vm0, %v1593_v11 }
 0x378   :  { %v604_v60 = vpop.trf.xlu0 }
 0x379   :  { %1486 = vmatmul.mubr.msk.f32.vlgmr.msra.gmra.mrb[12].mxu0 %vm617_vm3, %v604_v60 }
 0x37c   :  { %v605_v61 = vpop.trf.xlu0 }
 0x37d   :  { %1491 = vmatmul.mubr.msk.f32.vlgmr.msra.gmra.mrb[12].mxu1 %vm617_vm3, %v605_v61 }
 0x434   :  { %v760_v62 = vpop.f32.mrb[6].mxu1 }
 0x435   :  { %v1462_v63 = vpop.f32.mrb[7].mxu1 }
 0x438   :  { %v687_v0 = vpop.f32.mrb[6].mxu0 }
 0x439   :  { %v761_v1 = vadd.f32 %v760_v62, %v687_v0  ;;  %v1457_v2 = vpop.f32.mrb[7].mxu0 }
 0x43c   :  { %v835_v4 = vpop.f32.mrb[8].mxu0 }
 0x43d   :  { %v839_v5 = vadd.f32 %v835_v4, %v761_v1  ;;  %v1467_v6 = vpop.f32.mrb[9].mxu0 }
 0x440   :  { %v911_v7 = vpop.f32.mrb[8].mxu1 }
 0x441   :  { %v915_v8 = vadd.f32 %v911_v7, %v839_v5  ;;  %v1472_v9 = vpop.f32.mrb[9].mxu1 }
 0x444   :  { %v987_v10 = vpop.f32.mrb[10].mxu0 }
 0x445   :  { %v991_v12 = vadd.f32 %v987_v10, %v915_v8  ;;  %v1477_v11 = vpop.f32.mrb[11].mxu0 }
 0x448   :  { %v1063_v13 = vpop.f32.mrb[10].mxu1 }
 0x449   :  { %v1067_v14 = vadd.f32 %v1063_v13, %v991_v12  ;;  %v1482_v15 = vpop.f32.mrb[11].mxu1 }
 0x44c   :  { %v1139_v16 = vpop.f32.mrb[12].mxu0 }
 0x44d   :  { %v1143_v17 = vadd.f32 %v1139_v16, %v1067_v14  ;;  %v1487_v19 = vpop.f32.mrb[13].mxu0 }
 0x450   :  { %v1215_v20 = vpop.f32.mrb[12].mxu1 }
 0x451   :  { %v1219_v21 = vadd.f32 %v1215_v20, %v1143_v17  ;;  %v1492_v3 = vpop.f32.mrb[13].mxu1 }
 0x453   :  { %v1220_v22 = vadd.f32 %v1219_v21, %v1722_v18 }
 0x455   :  { %v1221_v23 = vsel %vm63_vm1, %v1220_v22, 0.0 }
 0x456   :  { %1222 = vadd.xlane.f32.xlu0 %v1221_v23 }
 0x4e3   :  { %v1223_v24 = vpop.xlane.xlu0 %1222 }
 0x4e4   :  { %v1225_v25 = vmul.f32 0.03125, %v1223_v24 }
 0x4e6   :  { %v1226_v26 = vsub.f32 %v1220_v22, %v1225_v25 }
 0x4e8   :  { %v1227_v27 = vmul.f32 %v1226_v26, %v1226_v26 }
 0x4ea   :  { %v1228_v28 = vsel %vm63_vm1, %v1227_v27, 0.0 }
 0x4eb   :  { %1229 = vadd.xlane.f32.xlu1 %v1228_v28 }
 0x578   :  { %v1230_v29 = vpop.xlane.xlu1 %1229 }
 0x579   :  { %v1231_v30 = vmul.f32 0.03125, %v1230_v29 }
 0x57b   :  { %v1232_v31 = vadd.f32 1e-05, %v1231_v30 }
 0x57d   :  { %1565 = vrsqrt.f32 %v1232_v31 }
 0x587   :  { %v1566_v32 = vpop.eup %1565 }
 0x588   :  { %v1234_v18 = vmul.f32 %v1566_v32, %v1226_v26 }
 0x58a   :  { %v1242_v35 = vmul.f32 %v1291_v33, %v1234_v18 }
 0x58c   :  { %v1250_v36 = vadd.f32 %v1292_v34, %v1242_v35 }
 0x58e   :  { %1251 = vst.msk [vmem:[#allocation2] sm:$0xff] %vm63_vm1, %v1250_v36 }
 0x58f   :  { %1578 = shalt.err (!%p1575_p4)
}
 0x590   :  { %s1579_s5 = scalar_lea.hbm %s1953_s15, 128 }
 0x591   :  { %p1580_p5 = scmp.ne.s32.totalorder %s1953_s15, %s1579_s5  ;;  %p1583_p6 = scmp.lt.u32.totalorder %s1579_s5, %s1953_s15 }
 0x593   :  { %p1585_p7 = pnand %p1583_p6, %p1580_p5 }
 0x595   :  { %1588 = shalt.err (!%p1585_p7)
}
 0x596   :  { %1261 = dma.vmem_to_hbm [thread:$0]  %s1259_s7, 128, %s1953_s15, [#allocation3]  }
 0x597   :  { %1589 = dma.done.wait [#allocation3], 128  }
 0x598   :  { %1590 = vsyncadd [#allocation3], 4294967168 }
 0x599   :  { %1265 = vsyncpa [#allocation3], 1 }

</bundles_post_ra>
